<compile_context>
chip_gen: v7x
topology: tpu7x:2x2x1
jax: 0.10.0
libtpu: 0.0.40
codegen_flags: <defaults>
</compile_context>

<pallas_src>
import numpy as np
import jax
import jax.numpy as jnp
from jax.experimental import pallas as pl
from jax.experimental.pallas import tpu as pltpu


def _group_all_kernel(xyz_ref, feat_ref, out_ref):
    # xyz_ref : (1, TN, 3)    points on sublanes, coords on lanes
    # feat_ref: (1, C, TN)    channel-major features
    # out_ref : (1, 3+C, TN)  [xyz^T | features] — lane-dense along TN
    xyz_t = jnp.transpose(xyz_ref[0], (1, 0))                       # (3, TN)
    out_ref[0] = jnp.concatenate(
        [xyz_t.astype(out_ref.dtype), feat_ref[0].astype(out_ref.dtype)], axis=0)


def _group_xyz_kernel(xyz_ref, out_ref):
    # features is None: output is just xyz transposed.
    out_ref[0] = jnp.transpose(xyz_ref[0], (1, 0)).astype(out_ref.dtype)


def _pick_tile(n):
    # Largest lane-friendly tile that divides N; fall back to a full-N block.
    for t in (512, 256, 128):
        if n % t == 0:
            return t
    return n


def group_all(xyz, new_xyz=None, features=None, *, use_xyz=True):
    """GroupAll forward.

    Args:
      xyz:      (B, N, 3) point coordinates.
      new_xyz:  ignored (kept for API parity with the PyTorch module).
      features: optional (B, C, N) point features.
    Returns:
      new_features: (B, 3+C, 1, N) if use_xyz and features is not None,
                    (B, C,   1, N) if features is not None and not use_xyz,
                    (B, 3,   1, N) if features is None.
    """
    del new_xyz  # ignored by GroupAll
    xyz = jnp.asarray(xyz)
    B, N, _ = xyz.shape
    TN = _pick_tile(N)
    grid = (B, N // TN)
    cparams = pltpu.CompilerParams(dimension_semantics=("parallel", "parallel"))

    if features is None:
        assert use_xyz, "Cannot have not features and not use xyz as a feature!"
        out = pl.pallas_call(
            _group_xyz_kernel,
            grid=grid,
            in_specs=[pl.BlockSpec((1, TN, 3), lambda b, n: (b, n, 0))],
            out_specs=pl.BlockSpec((1, 3, TN), lambda b, n: (b, 0, n)),
            out_shape=jax.ShapeDtypeStruct((B, 3, N), xyz.dtype),
            compiler_params=cparams,
        )(xyz)
        return out[:, :, None, :]

    features = jnp.asarray(features)
    C = features.shape[1]

    if not use_xyz:
        # Pure unsqueeze (view): no data movement or compute to put in a kernel.
        return features[:, :, None, :]

    out_dtype = jnp.result_type(xyz.dtype, features.dtype)
    out = pl.pallas_call(
        _group_all_kernel,
        grid=grid,
        in_specs=[
            pl.BlockSpec((1, TN, 3), lambda b, n: (b, n, 0)),   # xyz tile over N
            pl.BlockSpec((1, C, TN), lambda b, n: (b, 0, n)),   # features tile over N
        ],
        out_specs=pl.BlockSpec((1, 3 + C, TN), lambda b, n: (b, 0, n)),
        out_shape=jax.ShapeDtypeStruct((B, 3 + C, N), out_dtype),
        compiler_params=cparams,
    )(xyz, features)
    return out[:, :, None, :]


def _reference(xyz, features, use_xyz=True):
    xyz = np.asarray(xyz)
    g_xyz = np.transpose(xyz, (0, 2, 1))[:, :, None, :]               # (B, 3, 1, N)
    if features is not None:
        g_feat = np.asarray(features)[:, :, None, :]                   # (B, C, 1, N)
        return np.concatenate([g_xyz, g_feat], axis=1) if use_xyz else g_feat
    return g_xyz


if __name__ == "__main__":
    key = jax.random.PRNGKey(0)
    B, N, C = 2, 384, 4          # N = 3 * 128 -> exercises the N-tiling (grid = (2, 3))

    k1, k2 = jax.random.split(key)
    xyz = jax.random.uniform(k1, (B, N, 3), jnp.float32, minval=-1.0, maxval=1.0)
    features = jax.random.normal(k2, (B, C, N), jnp.float32)
    new_xyz = xyz[:, :16, :]     # ignored by GroupAll, passed for API parity

    nf = group_all(xyz, new_xyz, features, use_xyz=True)
    nf_xyz_only = group_all(xyz, new_xyz, None, use_xyz=True)
    jax.block_until_ready((nf, nf_xyz_only))

    ref = _reference(np.asarray(xyz), np.asarray(features), use_xyz=True)
    ref_xyz = _reference(np.asarray(xyz), None)

    assert nf.shape == (B, 3 + C, 1, N), nf.shape
    assert nf_xyz_only.shape == (B, 3, 1, N), nf_xyz_only.shape
    assert np.array_equal(np.asarray(nf), ref), "new_features mismatch"
    assert np.array_equal(np.asarray(nf_xyz_only), ref_xyz), "xyz-only mismatch"
    print("KERNEL_OK")
</pallas_src>

<mosaic_0001>
module attributes {stable_mosaic.version = 11 : i64} {
  func.func @_group_all_kernel(%arg0: i32, %arg1: i32, %arg2: memref<1x128x3xf32, #tpu.memory_space<vmem>>, %arg3: memref<1x4x128xf32, #tpu.memory_space<vmem>>, %arg4: memref<1x7x128xf32, #tpu.memory_space<vmem>>) attributes {dimension_semantics = [#tpu.dimension_semantics<parallel>, #tpu.dimension_semantics<parallel>], iteration_bounds = array<i64: 2, 3>, scalar_prefetch = 0 : i64, scratch_operands = 0 : i64, tpu.core_type = #tpu.core_type<tc>, window_params = [{transform_indices = @transform_0, window_bounds = array<i64: 1, 128, 3>}, {transform_indices = @transform_1, window_bounds = array<i64: 1, 4, 128>}, {transform_indices = @transform_2, window_bounds = array<i64: 1, 7, 128>}]} {
    %c0 = arith.constant 0 : index
    %c0_0 = arith.constant 0 : index
    %c0_1 = arith.constant 0 : index
    %0 = vector.load %arg2[%c0, %c0_0, %c0_1] : memref<1x128x3xf32, #tpu.memory_space<vmem>>, vector<1x128x3xf32>
    %1 = vector.shape_cast %0 : vector<1x128x3xf32> to vector<128x3xf32>
    %2 = tpu.transpose %1, [1, 0] : vector<128x3xf32> -> vector<3x128xf32>
    %c0_2 = arith.constant 0 : index
    %c0_3 = arith.constant 0 : index
    %c0_4 = arith.constant 0 : index
    %3 = vector.load %arg3[%c0_2, %c0_3, %c0_4] : memref<1x4x128xf32, #tpu.memory_space<vmem>>, vector<1x4x128xf32>
    %4 = vector.shape_cast %3 : vector<1x4x128xf32> to vector<4x128xf32>
    %5 = tpu.concatenate %2, %4 in 0 : vector<3x128xf32>, vector<4x128xf32> -> vector<7x128xf32>
    %c0_5 = arith.constant 0 : index
    %c0_6 = arith.constant 0 : index
    %c0_7 = arith.constant 0 : index
    %6 = vector.load %arg4[%c0_5, %c0_6, %c0_7] : memref<1x7x128xf32, #tpu.memory_space<vmem>>, vector<1x7x128xf32>
    %7 = vector.shape_cast %6 : vector<1x7x128xf32> to vector<7x128xf32>
    %8 = vector.shape_cast %5 : vector<7x128xf32> to vector<1x7x128xf32>
    tpu.vector_store %arg4[%c0_5, %c0_6, %c0_7], %8 {strides = array<i32>} : memref<1x7x128xf32, #tpu.memory_space<vmem>>, vector<1x7x128xf32>,
    return
  }
  func.func @transform_0(%arg0: i32, %arg1: i32) -> (i32, i32, i32) {
    %c0_i32 = arith.constant 0 : i32
    %c0_i32_0 = arith.constant 0 : i32
    return %arg0, %arg1, %c0_i32 : i32, i32, i32
  }
  func.func @transform_1(%arg0: i32, %arg1: i32) -> (i32, i32, i32) {
    %c0_i32 = arith.constant 0 : i32
    %c0_i32_0 = arith.constant 0 : i32
    return %arg0, %c0_i32, %arg1 : i32, i32, i32
  }
  func.func @transform_2(%arg0: i32, %arg1: i32) -> (i32, i32, i32) {
    %c0_i32 = arith.constant 0 : i32
    %c0_i32_0 = arith.constant 0 : i32
    return %arg0, %c0_i32, %arg1 : i32, i32, i32
  }
}

</mosaic_0001>

<bundles_post_ra>
// kernel: tpu_custom_call.1
= control target key start
LH: loop header
LB: loop body
LE: loop exit
PB: predicated region body
PF: predicated region fallthrough
CT: control target
= control target key end

     0   :  { %s478_s9 = smov 0   ;;  %s480_s10 = smov 0   ;;  %s559_s0 = inlined_call_operand.vmem [shape: f32[2,384,3], index: 0, kind: input, shape index: {}]   ;;  %s560_s1 = inlined_call_operand.vmem [shape: f32[2,4,384], index: 1, kind: input, shape index: {}]   ;;  %s561_s2 = inlined_call_operand.vmem [shape: f32[2,7,384], index: 2, kind: output, shape index: {}]  }
   0x1   :  { %s482_s11 = smov 0   ;;  %s484_s12 = smov 0  }
   0x2   :  { %s486_s13 = smov 0  }
   0x3 LB: > { %s21_s14 = sadd.s32 1, %s453_s11  ;;  %s24_s15 = sadd.s32 1, %s457_s12  ;;  %s461_s13 = sphi %s486_s13, %s12_s13   ;;  %s457_s12 = sphi %s484_s12, %s565_s12   ;;  %s453_s11 = sphi %s482_s11, %s564_s11   ;;  %s449_s10 = sphi %s480_s10, %s563_s10   ;;  %s445_s9 = sphi %s478_s9, %s562_s9  }
   0x4   : > { %p22_p0 = scmp.ge.s32.totalorder %s21_s14, 3  ;;  %p374_p1 = scmp.ge.s32.totalorder %s461_s13, 1 }
   0x5   : > { %p148_p2 = scmp.lt.s32.totalorder %s461_s13, 7 }
   0x6   : > { %s567_s14 = smov (%p22_p0, %s21_s14), 0  ;;  %s569_s15 = smov (!%p22_p0, %s24_s15), %s457_s12 }
   0x7   : > { %p149_p3 = pnand %p374_p1, %p148_p2  ;;  %p26_p4 = scmp.ge.s32.totalorder %s569_s15, 2 }
   0x8   : > { %s375_s16 = sshll.u32 (!%p149_p3), %s445_s9, 4  ;;  %p186_p5 = scmp.lt.s32.totalorder (!%p149_p3), %s449_s10, 1  ;;  %vm263_vm0 = vcmask (!%p149_p3), 1042432  }
   0x9   : > { %s571_s15 = smov (%p26_p4, %s569_s15), 0  ;;  %152 = sbr.rel (%p149_p3) target bundleno = 154 (0x9a), region = 28 }
   0xa   : > { %p188_p6 = scmp.lt.s32.totalorder (!%p149_p3), %s375_s16, 47  ;;  %p197_p7 = scmp.lt.s32.totalorder (!%p149_p3), %s445_s9, 2 }
  0x10   : > { %s573_s10 = smov (!%p186_p5, %s449_s10), 1  ;;  %s575_s16 = smov (!%p188_p6, %s375_s16), 47 }
  0x11   : > { %s381_s17 = smul.u32 48, %s573_s10  ;;  %s577_s9 = smov (!%p197_p7, %s445_s9), 2 }
  0x12   : > { %s382_s23 = smul.u32 3, %s573_s10 }
  0x13   : > { %s191_s18 = sadd.s32 %s381_s17, %s575_s16 }
  0x14   : > { %s376_s19 = sshll.u32 %s191_s18, 3  ;;  %s200_s24 = sadd.s32 %s382_s23, %s577_s9 }
  0x15   : > { %s517_s22 = scalar_lea.vmem %s559_s0, %s376_s19  ;;  %s377_s25 = sshll.u32 %s200_s24, 2 }
  0x16   : > { %v211_v0 = vld [vmem:[%s517_s22] sm:$0xff]  ;;  %v212_v1 = vld [vmem:[%s517_s22 + $0x8] sm:$0xff]  ;;  %v213_v2 = vld [vmem:[%s517_s22 + $0x10] sm:$0xff]  ;;  %s202_s28 = scalar_lea.vmem %s560_s1, %s377_s25  ;;  %s378_s29 = sshll.u32 %s200_s24, 3 }
  0x17   : > { %227 = vxpose.xlu0.b32.start [1/16] (narrow) %v211_v0, 8  ;;  %v214_v3 = vld [vmem:[%s517_s22 + $0x18] sm:$0xff]  ;;  %v215_v4 = vld [vmem:[%s517_s22 + $0x20] sm:$0xff]  ;;  %v216_v5 = vld [vmem:[%s517_s22 + $0x28] sm:$0xff]  ;;  %s210_s4 = scalar_lea.vmem %s561_s2, %s378_s29 }
  0x18   : > { %v217_v6 = vld [vmem:[%s517_s22 + $0x30] sm:$0xff]  ;;  %v218_v7 = vld [vmem:[%s517_s22 + $0x38] sm:$0xff]  ;;  %v219_v8 = vld [vmem:[%s517_s22 + $0x40] sm:$0xff] }
  0x19   : > { %v220_v9 = vld [vmem:[%s517_s22 + $0x48] sm:$0xff]  ;;  %v221_v10 = vld [vmem:[%s517_s22 + $0x50] sm:$0xff]  ;;  %v222_v11 = vld [vmem:[%s517_s22 + $0x58] sm:$0xff] }
  0x1a   : > { %v223_v12 = vld [vmem:[%s517_s22 + $0x60] sm:$0xff]  ;;  %v224_v13 = vld [vmem:[%s517_s22 + $0x68] sm:$0xff]  ;;  %v225_v14 = vld [vmem:[%s517_s22 + $0x70] sm:$0xff] }
  0x1b   : > { %228 = vxpose.xlu0.b32.cont [2/16] (narrow) %v212_v1, 8  ;;  %v226_v15 = vld [vmem:[%s517_s22 + $0x78] sm:$0xff]  ;;  %v259_v16 = vld [vmem:[%s202_s28] sm:$0xf] }
  0x1c   : > { %v261_v17 = vrot.slane %v259_v16, 5 }
  0x1f   : > { %229 = vxpose.xlu0.b32.cont [3/16] (narrow) %v213_v2, 8 }
  0x23   : > { %230 = vxpose.xlu0.b32.cont [4/16] (narrow) %v214_v3, 8 }
  0x27   : > { %231 = vxpose.xlu0.b32.cont [5/16] (narrow) %v215_v4, 8 }
  0x2b   : > { %232 = vxpose.xlu0.b32.cont [6/16] (narrow) %v216_v5, 8 }
  0x2f   : > { %233 = vxpose.xlu0.b32.cont [7/16] (narrow) %v217_v6, 8 }
  0x33   : > { %234 = vxpose.xlu0.b32.cont [8/16] (narrow) %v218_v7, 8 }
  0x37   : > { %235 = vxpose.xlu0.b32.cont [9/16] (narrow) %v219_v8, 8 }
  0x3b   : > { %236 = vxpose.xlu0.b32.cont [10/16] (narrow) %v220_v9, 8 }
  0x3f   : > { %237 = vxpose.xlu0.b32.cont [11/16] (narrow) %v221_v10, 8 }
  0x43   : > { %238 = vxpose.xlu0.b32.cont [12/16] (narrow) %v222_v11, 8 }
  0x47   : > { %239 = vxpose.xlu0.b32.cont [13/16] (narrow) %v223_v12, 8 }
  0x4b   : > { %240 = vxpose.xlu0.b32.cont [14/16] (narrow) %v224_v13, 8 }
  0x4f   : > { %241 = vxpose.xlu0.b32.cont [15/16] (narrow) %v225_v14, 8 }
  0x53   : > { %242 = vxpose.xlu0.b32.end [16/16] (narrow) %v226_v15, 8 }
  0x97   : > { %v243_v18 = vpop.trf.xlu0 }
  0x98   : > { %v264_v19 = vsel %vm263_vm0, %v243_v18, %v261_v17 }
  0x99   : > { %265 = vst [vmem:[%s210_s4] sm:$0x7f] %v264_v19 }
  0x9a PF: > { %s12_s13 = sadd.s32 1, %s461_s13   ;;  %s562_s9 = smov %s453_s11 }
  0x9b   : > { %p9_p8 = scmp.ge.s32.totalorder %s12_s13, 8   ;;  %s563_s10 = smov %s457_s12 }
  0x9c   : > { %s564_s11 = smov %s567_s14  ;;  %s565_s12 = smov %s571_s15 }
  0x9d   :  { %11 = sbr.rel (!%p9_p8) target bundleno = 3 (0x3), region = 61 }

</bundles_post_ra>
